<compile_context>
chip_gen: v5e
topology: v5e:2x2
jax: 0.10.0
libtpu: 0.0.40
codegen_flags: <defaults>
</compile_context>

<pallas_src>
import jax
import jax.numpy as jnp
from jax.experimental import pallas as pl
from jax.experimental.pallas import tpu as pltpu


def _linear_add_relu_kernel(x_ref, wt_ref, b_ref, o_ref):
    # x_ref: (tm, F_in)   wt_ref: (F_in, F_out)  (pre-transposed weight)
    # b_ref: (1, F_out)   (bias + other, folded in wrapper)
    # o_ref: (tm, F_out)
    y = jnp.dot(x_ref[...], wt_ref[...], preferred_element_type=jnp.float32)
    y = y + b_ref[...]
    o_ref[...] = jnp.maximum(y, 0.0).astype(o_ref.dtype)


def _round_up(v, m):
    return (v + m - 1) // m * m


def model_forward(x, weight, bias, other=1.0, tm_max=512):
    """Equivalent of: relu(nn.Linear(in_out, in_out)(x) + other)."""
    f_out, f_in = weight.shape
    lead = x.shape[:-1]
    x2 = x.reshape(-1, f_in)
    m = x2.shape[0]

    # Fold `other` into the bias once, outside the kernel.
    bias_eff = (bias.astype(jnp.float32) + jnp.float32(other)).reshape(1, f_out)
    # Pre-transposed weight: (F_in, F_out). Done once at the JAX level, so the
    # kernel's dot has no in-kernel `.T` / XLU transpose on its critical path.
    wt = weight.T

    # Row tile: multiple of 8 sublanes, capped at tm_max so per-tile VMEM stays
    # small enough to double-buffer comfortably (incl. v7x's 64 MiB VMEM).
    tm = min(tm_max, _round_up(m, 8))
    m_pad = _round_up(m, tm)
    if m_pad != m:
        x2 = jnp.pad(x2, ((0, m_pad - m), (0, 0)))

    grid = (m_pad // tm,)

    # NOTE: with F_out < 128 the output stores are lane-masked; for large real
    # deployments pad F_out to 128 (or transpose the product) for lane-dense
    # stores. Left as-is here since the module's feature dim is tiny.
    out = pl.pallas_call(
        _linear_add_relu_kernel,
        out_shape=jax.ShapeDtypeStruct((m_pad, f_out), x.dtype),
        grid=grid,
        in_specs=[
            pl.BlockSpec((tm, f_in), lambda i: (i, 0)),     # x: streamed over M
            pl.BlockSpec((f_in, f_out), lambda i: (0, 0)),  # weight: resident
            pl.BlockSpec((1, f_out), lambda i: (0, 0)),     # bias+other: resident
        ],
        out_specs=pl.BlockSpec((tm, f_out), lambda i: (i, 0)),
        compiler_params=pltpu.CompilerParams(
            dimension_semantics=("parallel",),
        ),
    )(x2, wt, bias_eff)

    if m_pad != m:
        out = out[:m]
    return out.reshape(lead + (f_out,))


if __name__ == "__main__":
    # Small shapes consistent with the module: x = (1, 8, 3, in_out)
    in_out = 32
    key = jax.random.PRNGKey(0)
    kx, kw, kb = jax.random.split(key, 3)

    x = jax.random.normal(kx, (1, 8, 3, in_out), dtype=jnp.float32)
    # Deterministic PyTorch-style Linear init: U(-1/sqrt(fan_in), 1/sqrt(fan_in))
    bound = 1.0 / (in_out ** 0.5)
    weight = jax.random.uniform(kw, (in_out, in_out), jnp.float32, -bound, bound)
    bias = jax.random.uniform(kb, (in_out,), jnp.float32, -bound, bound)

    out = model_forward(x, weight, bias, other=1.0)
    jax.block_until_ready(out)

    # Reference check in plain JAX
    ref = jnp.maximum(jnp.einsum("bchf,of->bcho", x, weight) + bias + 1.0, 0.0)
    assert out.shape == ref.shape
    assert jnp.allclose(out, ref, atol=1e-5, rtol=1e-5)

    print("KERNEL_OK")
</pallas_src>

<mosaic_0001>
module attributes {stable_mosaic.version = 11 : i64} {
  func.func @_linear_add_relu_kernel(%arg0: i32, %arg1: memref<24x32xf32, #tpu.memory_space<vmem>>, %arg2: memref<32x32xf32, #tpu.memory_space<vmem>>, %arg3: memref<1x32xf32, #tpu.memory_space<vmem>>, %arg4: memref<24x32xf32, #tpu.memory_space<vmem>>) attributes {dimension_semantics = [#tpu.dimension_semantics<parallel>], iteration_bounds = array<i64: 1>, scalar_prefetch = 0 : i64, scratch_operands = 0 : i64, tpu.core_type = #tpu.core_type<tc>, window_params = [{transform_indices = @transform_0, window_bounds = array<i64: 24, 32>}, {pipeline_mode = #tpu.pipeline_mode<synchronous>, transform_indices = @transform_1, window_bounds = array<i64: 32, 32>}, {pipeline_mode = #tpu.pipeline_mode<synchronous>, transform_indices = @transform_2, window_bounds = array<i64: 1, 32>}, {transform_indices = @transform_3, window_bounds = array<i64: 24, 32>}]} {
    %c0 = arith.constant 0 : index
    %c0_0 = arith.constant 0 : index
    %0 = vector.load %arg1[%c0, %c0_0] : memref<24x32xf32, #tpu.memory_space<vmem>>, vector<24x32xf32>
    %c0_1 = arith.constant 0 : index
    %c0_2 = arith.constant 0 : index
    %1 = vector.load %arg2[%c0_1, %c0_2] : memref<32x32xf32, #tpu.memory_space<vmem>>, vector<32x32xf32>
    %cst = arith.constant dense<0.000000e+00> : vector<24x32xf32>
    %2 = tpu.matmul %0, %1, %cst {dimension_numbers = #tpu.dot_dimension_numbers<[1], [0], [0], [1], [0, 0, 1, 1], [], []>} : vector<24x32xf32>, vector<32x32xf32>, vector<24x32xf32> -> vector<24x32xf32>
    %c0_3 = arith.constant 0 : index
    %c0_4 = arith.constant 0 : index
    %3 = vector.load %arg3[%c0_3, %c0_4] : memref<1x32xf32, #tpu.memory_space<vmem>>, vector<1x32xf32>
    %4 = vector.broadcast %3 : vector<1x32xf32> to vector<24x32xf32>
    %5 = arith.addf %2, %4 : vector<24x32xf32>
    %cst_5 = arith.constant 0.000000e+00 : f32
    %6 = vector.broadcast %cst_5 : f32 to vector<24x32xf32>
    %7 = arith.maximumf %5, %6 : vector<24x32xf32>
    %c0_6 = arith.constant 0 : index
    %c0_7 = arith.constant 0 : index
    %8 = vector.load %arg4[%c0_6, %c0_7] : memref<24x32xf32, #tpu.memory_space<vmem>>, vector<24x32xf32>
    tpu.vector_store %arg4[%c0_6, %c0_7], %7 {strides = array<i32>} : memref<24x32xf32, #tpu.memory_space<vmem>>, vector<24x32xf32>,
    return
  }
  func.func @transform_0(%arg0: i32) -> (i32, i32) {
    %c0_i32 = arith.constant 0 : i32
    %c0_i32_0 = arith.constant 0 : i32
    return %arg0, %c0_i32 : i32, i32
  }
  func.func @transform_1(%arg0: i32) -> (i32, i32) {
    %c0_i32 = arith.constant 0 : i32
    %c0_i32_0 = arith.constant 0 : i32
    %c0_i32_1 = arith.constant 0 : i32
    return %c0_i32, %c0_i32_0 : i32, i32
  }
  func.func @transform_2(%arg0: i32) -> (i32, i32) {
    %c0_i32 = arith.constant 0 : i32
    %c0_i32_0 = arith.constant 0 : i32
    %c0_i32_1 = arith.constant 0 : i32
    return %c0_i32, %c0_i32_0 : i32, i32
  }
  func.func @transform_3(%arg0: i32) -> (i32, i32) {
    %c0_i32 = arith.constant 0 : i32
    %c0_i32_0 = arith.constant 0 : i32
    return %arg0, %c0_i32 : i32, i32
  }
}

</mosaic_0001>

<bundles_post_ra>
// kernel: tpu_custom_call.1
= control target key start
LH: loop header
LB: loop body
LE: loop exit
PB: predicated region body
PF: predicated region fallthrough
CT: control target
= control target key end

     0   :  { %8 = vsyncpa [#allocation3], 0  ;;  %s267_s0 = inlined_call_operand.hbm [shape: f32[24,32], index: 0, kind: input, shape index: {}]   ;;  %s268_s1 = inlined_call_operand.hbm [shape: f32[32,32], index: 1, kind: input, shape index: {}]   ;;  %s269_s2 = inlined_call_operand.vmem [shape: f32[1,32], index: 2, kind: input, shape index: {}]   ;;  %s270_s3 = inlined_call_operand.hbm [shape: f32[24,32], index: 3, kind: output, shape index: {}]  }
   0x1   :  { %9 = vsyncpa [#allocation6], 0 }
   0x2   :  { %10 = vsyncpa [#allocation4], 0  ;;  %s15_s14 = sshll.u32 %s267_s0, 4  ;;  %s215_s15 = smov [#allocation2]   ;;  %s16_s14 = int_to_ptr.hbm [resolvable:$true] %s15_s14 }
   0x3   :  { %s17_s16 = sshll.u32 %s215_s15, 4  ;;  %s28_s19 = sshll.u32 %s268_s1, 4  ;;  %s18_s16 = int_to_ptr.vmem [resolvable:$true] %s17_s16  ;;  %s29_s19 = int_to_ptr.hbm [resolvable:$true] %s28_s19 }
   0x4   :  { %s216_s20 = smov 128   ;;  %s217_s21 = smov 8  }
   0x5   :  { %23 = dma.hbm_to_vmem [thread:$0]  %s16_s14, 384, %s18_s16, [#allocation3], %s216_s20, %s216_s20, %s217_s21  }
   0x6   :  { %s218_s22 = smov [#allocation5]  }
   0x7   :  { %s30_s23 = sshll.u32 %s218_s22, 4  ;;  %s31_s23 = int_to_ptr.vmem [resolvable:$true] %s30_s23 }
   0x8   :  { %36 = dma.hbm_to_vmem [thread:$0]  %s29_s19, 512, %s31_s23, [#allocation6], %s216_s20, %s216_s20, %s217_s21  }
   0x9   :  { %209 = dma.done.wait [#allocation3], 384  }
   0xa   :  { %210 = vsyncadd [#allocation3], 4294966912 }
   0xb   :  { %211 = dma.done.wait [#allocation6], 512  }
   0xc   :  { %212 = vsyncadd [#allocation6], 4294966784  ;;  %v53_v0 = vld [vmem:[#allocation5 + $0x18] sm:$0xff]  ;;  %v52_v1 = vld [vmem:[#allocation5 + $0x10] sm:$0xff]  ;;  %vm58_vm0 = vcmask 261120   ;;  %s219_s24 = smov [#allocation7]  }
   0xd   :  { %124 = vmatpush.msra.mxu2 %v53_v0  ;;  %80 = vmatpush.msra.mxu0 %v53_v0  ;;  %v51_v2 = vld [vmem:[#allocation5 + $0x8] sm:$0xff]  ;;  %v50_v3 = vld [vmem:[#allocation5] sm:$0xff]  ;;  %v49_v4 = vld [vmem:[#allocation2 + $0x10] sm:$0xff]  ;;  %s104_s25 = sshll.u32 %s219_s24, 4  ;;  %s106_s28 = sshll.u32 %s270_s3, 4  ;;  %s105_s25 = int_to_ptr.vmem [resolvable:$true] %s104_s25  ;;  %s107_s28 = int_to_ptr.hbm [resolvable:$true] %s106_s28 }
   0xe   :  { %123 = vmatpush.msra.mxu1 %v53_v0  ;;  %v47_v5 = vld [vmem:[#allocation2] sm:$0xff]  ;;  %v48_v6 = vld [vmem:[#allocation2 + $0x8] sm:$0xff] }
   0xf   :  { %126 = vmatpush.msra.mxu2 %v52_v1  ;;  %81 = vmatpush.msra.mxu0 %v52_v1  ;;  %v136_v7 = vld [vmem:[%s269_s2] ss:$0 sm:$0xff] }
  0x10   :  { %125 = vmatpush.msra.mxu1 %v52_v1 }
  0x11   :  { %128 = vmatpush.msra.mxu2 %v51_v2  ;;  %82 = vmatpush.msra.mxu0 %v51_v2 }
  0x12   :  { %127 = vmatpush.msra.mxu1 %v51_v2 }
  0x13   :  { %130 = vmatpush.msra.mxu2 %v50_v3  ;;  %83 = vmatpush.msra.mxu0 %v50_v3 }
  0x14   :  { %122 = vmatmul.msk.f32.vlgmr.msra.gmra.mxu2 %vm58_vm0, %v49_v4  ;;  %129 = vmatpush.msra.mxu1 %v50_v3 }
  0x15   :  { %120 = vmatmul.msk.f32.vlgmr.msra.gmra.mxu0 %vm58_vm0, %v47_v5  ;;  %121 = vmatmul.msk.f32.vlgmr.msra.gmra.mxu1 %vm58_vm0, %v48_v6 }
  0x92   :  { %v85_v8 = vpop.f32.mrf.mxu0  ;;  %v88_v9 = vpop.f32.mrf.mxu1 }
  0x93   :  { %v86_v10 = vadd.f32 %v136_v7, %v85_v8  ;;  %v89_v11 = vadd.f32 %v136_v7, %v88_v9 }
  0x95   :  { %v94_v12 = vmax.f32 %v86_v10, 0.0  ;;  %v95_v13 = vmax.f32 %v89_v11, 0.0 }
  0x97   :  { %97 = vst.msk [vmem:[#allocation7] sm:$0xff] %vm58_vm0, %v94_v12  ;;  %v91_v14 = vpop.f32.mrf.mxu2 }
  0x98   :  { %98 = vst.msk [vmem:[#allocation7 + $0x8] sm:$0xff] %vm58_vm0, %v95_v13  ;;  %v92_v15 = vadd.f32 %v136_v7, %v91_v14 }
  0x9a   :  { %v96_v16 = vmax.f32 %v92_v15, 0.0 }
  0x9c   :  { %99 = vst.msk [vmem:[#allocation7 + $0x10] sm:$0xff] %vm58_vm0, %v96_v16 }
  0x9d   :  { %112 = dma.vmem_to_hbm [thread:$0]  %s105_s25, 384, %s107_s28, [#allocation4], %s216_s20, %s216_s20, %s217_s21  }
  0x9e   :  { %213 = dma.done.wait [#allocation4], 384  }
  0x9f   :  { %214 = vsyncadd [#allocation4], 4294966912 }
  0xa0   :  { %117 = vsyncpa [#allocation3], 1 }
  0xa1   :  { %118 = vsyncpa [#allocation6], 1 }
  0xa2   :  { %119 = vsyncpa [#allocation4], 1 }

</bundles_post_ra>
